<compile_context>
chip_gen: v5e
topology: v5e:2x2
jax: 0.10.0
libtpu: 0.0.40
codegen_flags: <defaults>
</compile_context>

<pallas_src>
import math

import jax
import jax.numpy as jnp
from jax.experimental import pallas as pl
from jax.experimental.pallas import tpu as pltpu


def _round_up(x, m):
    return (x + m - 1) // m * m


# ------------- Stage 1: support = x @ W + b (lane-dense, bias folded once) ----

def _support_kernel(x_ref, w_ref, b_ref, o_ref):
    # MXU matmul with f32 accumulation; bias add stays in f32 (v5e-safe).
    s = jnp.dot(x_ref[...], w_ref[...], preferred_element_type=jnp.float32)
    s = s + b_ref[...]                      # [1, F_pad] broadcasts over rows
    o_ref[...] = s.astype(o_ref.dtype)


# ------------- Stage 2: out = adj @ support (tiled, f32 accumulator) ----------

def _spmm_kernel(adj_ref, s_ref, o_ref, acc_ref):
    k = pl.program_id(1)

    @pl.when(k == 0)
    def _():
        acc_ref[...] = jnp.zeros_like(acc_ref)

    acc_ref[...] += jnp.dot(
        adj_ref[...], s_ref[...], preferred_element_type=jnp.float32
    )

    @pl.when(k == pl.num_programs(1) - 1)
    def _():
        o_ref[...] = acc_ref[...].astype(o_ref.dtype)


def gcn_layer(x, weight, bias, adj, *, compute_dtype=jnp.bfloat16):
    """Fused GCN layer: adj @ (x @ weight + bias).

    x:      [N, F_in]   float
    weight: [F_in, F_out]
    bias:   [F_out] or None
    adj:    [N, N] dense adjacency (dense-equivalent of the sparse operand)
    returns [N, F_out] in x.dtype
    """
    n, f_in = x.shape
    f_out = weight.shape[1]
    out_dtype = x.dtype

    # Lane-dense padding: feature dims up to multiples of 128.
    f_in_p = _round_up(f_in, 128)
    f_out_p = _round_up(f_out, 128)

    # Row / contraction tiles for the dominant adj @ support matmul.
    # 256x512 bf16 adj tiles = 256 KiB (512 KiB double-buffered): comfortably
    # within v5e/v6e/v7x VMEM budgets while keeping DMAs large.
    tm = 256 if n > 128 else 128
    tk = 512 if n > 256 else tm
    n_p = _round_up(n, max(tm, tk))

    # Zero-pad operands (padded rows/cols contribute nothing to the result:
    # padded adj columns are zero, so bias leaking into padded support rows is
    # multiplied away; padded output rows/cols are sliced off below).
    x_p = jnp.zeros((n_p, f_in_p), compute_dtype).at[:n, :f_in].set(
        x.astype(compute_dtype))
    w_p = jnp.zeros((f_in_p, f_out_p), compute_dtype).at[:f_in, :f_out].set(
        weight.astype(compute_dtype))
    b_p = jnp.zeros((1, f_out_p), jnp.float32)
    if bias is not None:
        b_p = b_p.at[0, :f_out].set(bias.astype(jnp.float32))
    adj_p = jnp.zeros((n_p, n_p), compute_dtype).at[:n, :n].set(
        adj.astype(compute_dtype))

    vmem_limit = 32 * 1024 * 1024  # safe on all of v5e / v6e / v7x

    # Stage 1: support = x @ W + b  (computed once, gridded over row blocks).
    support = pl.pallas_call(
        _support_kernel,
        out_shape=jax.ShapeDtypeStruct((n_p, f_out_p), compute_dtype),
        grid=(n_p // tm,),
        in_specs=[
            pl.BlockSpec((tm, f_in_p), lambda i: (i, 0)),       # x tile
            pl.BlockSpec((f_in_p, f_out_p), lambda i: (0, 0)),  # full W
            pl.BlockSpec((1, f_out_p), lambda i: (0, 0)),       # bias
        ],
        out_specs=pl.BlockSpec((tm, f_out_p), lambda i: (i, 0)),
        compiler_params=pltpu.CompilerParams(
            dimension_semantics=("parallel",),
            vmem_limit_bytes=vmem_limit,
        ),
    )(x_p, w_p, b_p)

    # Stage 2: out = adj @ support, tiled with persistent f32 accumulator.
    out_p = pl.pallas_call(
        _spmm_kernel,
        out_shape=jax.ShapeDtypeStruct((n_p, f_out_p), out_dtype),
        grid_spec=pltpu.PrefetchScalarGridSpec(
            num_scalar_prefetch=0,
            grid=(n_p // tm, n_p // tk),                 # reduction axis last
            in_specs=[
                pl.BlockSpec((tm, tk), lambda i, k: (i, k)),        # adj tile
                pl.BlockSpec((tk, f_out_p), lambda i, k: (k, 0)),   # support
            ],
            out_specs=pl.BlockSpec((tm, f_out_p), lambda i, k: (i, 0)),
            scratch_shapes=[pltpu.VMEM((tm, f_out_p), jnp.float32)],
        ),
        compiler_params=pltpu.CompilerParams(
            dimension_semantics=("parallel", "arbitrary"),
            vmem_limit_bytes=vmem_limit,
        ),
    )(adj_p, support)

    return out_p[:n, :f_out]


def xavier_uniform(key, fan_in, fan_out, dtype=jnp.float32):
    # Matches torch.nn.init.xavier_uniform_ (gain=1).
    a = math.sqrt(6.0 / (fan_in + fan_out))
    return jax.random.uniform(key, (fan_in, fan_out), dtype, minval=-a, maxval=a)


if __name__ == "__main__":
    # Small deterministic example: N nodes, F_in -> F_out features.
    N, F_IN, F_OUT = 64, 32, 16

    key = jax.random.PRNGKey(0)
    k_x, k_w, k_adj = jax.random.split(key, 3)

    x = jax.random.normal(k_x, (N, F_IN), dtype=jnp.float32)

    # Parameters: xavier_uniform weight, zero bias (as in module __init__).
    weight = xavier_uniform(k_w, F_IN, F_OUT)
    bias = jnp.zeros((F_OUT,), dtype=jnp.float32)

    # Dense adjacency standing in for the sparse matrix of torch.sparse.mm:
    # random 0/1 links with self-loops, row-normalized.
    a = (jax.random.uniform(k_adj, (N, N)) < 0.1).astype(jnp.float32)
    a = a + jnp.eye(N, dtype=jnp.float32)
    adj = a / jnp.sum(a, axis=1, keepdims=True)

    out = gcn_layer(x, weight, bias, adj)
    out = jax.block_until_ready(out)

    # Pure-JAX f32 reference check (loosened tolerance: bf16 inputs, f32 accum).
    ref = adj @ (x @ weight + bias)
    assert out.shape == (N, F_OUT)
    assert jnp.allclose(out, ref, atol=5e-2, rtol=5e-2), "mismatch vs reference"

    print("KERNEL_OK")
</pallas_src>

<mosaic_0001>
module attributes {stable_mosaic.version = 11 : i64} {
  func.func @_support_kernel(%arg0: i32, %arg1: memref<128x128xbf16, #tpu.memory_space<vmem>>, %arg2: memref<128x128xbf16, #tpu.memory_space<vmem>>, %arg3: memref<1x128xf32, #tpu.memory_space<vmem>>, %arg4: memref<128x128xbf16, #tpu.memory_space<vmem>>) attributes {dimension_semantics = [#tpu.dimension_semantics<parallel>], iteration_bounds = array<i64: 1>, scalar_prefetch = 0 : i64, scratch_operands = 0 : i64, tpu.core_type = #tpu.core_type<tc>, window_params = [{transform_indices = @transform_0, window_bounds = array<i64: 128, 128>}, {pipeline_mode = #tpu.pipeline_mode<synchronous>, transform_indices = @transform_1, window_bounds = array<i64: 128, 128>}, {pipeline_mode = #tpu.pipeline_mode<synchronous>, transform_indices = @transform_2, window_bounds = array<i64: 1, 128>}, {transform_indices = @transform_3, window_bounds = array<i64: 128, 128>}]} {
    %c0 = arith.constant 0 : index
    %c0_0 = arith.constant 0 : index
    %0 = vector.load %arg1[%c0, %c0_0] : memref<128x128xbf16, #tpu.memory_space<vmem>>, vector<128x128xbf16>
    %c0_1 = arith.constant 0 : index
    %c0_2 = arith.constant 0 : index
    %1 = vector.load %arg2[%c0_1, %c0_2] : memref<128x128xbf16, #tpu.memory_space<vmem>>, vector<128x128xbf16>
    %cst = arith.constant dense<0.000000e+00> : vector<128x128xf32>
    %2 = tpu.matmul %0, %1, %cst {dimension_numbers = #tpu.dot_dimension_numbers<[1], [0], [0], [1], [0, 0, 1, 1], [], []>} : vector<128x128xbf16>, vector<128x128xbf16>, vector<128x128xf32> -> vector<128x128xf32>
    %c0_3 = arith.constant 0 : index
    %c0_4 = arith.constant 0 : index
    %3 = vector.load %arg3[%c0_3, %c0_4] : memref<1x128xf32, #tpu.memory_space<vmem>>, vector<1x128xf32>
    %4 = vector.broadcast %3 : vector<1x128xf32> to vector<128x128xf32>
    %5 = arith.addf %2, %4 : vector<128x128xf32>
    %6 = arith.truncf %5 : vector<128x128xf32> to vector<128x128xbf16>
    %c0_5 = arith.constant 0 : index
    %c0_6 = arith.constant 0 : index
    %7 = vector.load %arg4[%c0_5, %c0_6] : memref<128x128xbf16, #tpu.memory_space<vmem>>, vector<128x128xbf16>
    tpu.vector_store %arg4[%c0_5, %c0_6], %6 {strides = array<i32>} : memref<128x128xbf16, #tpu.memory_space<vmem>>, vector<128x128xbf16>,
    return
  }
  func.func @transform_0(%arg0: i32) -> (i32, i32) {
    %c0_i32 = arith.constant 0 : i32
    %c0_i32_0 = arith.constant 0 : i32
    return %arg0, %c0_i32 : i32, i32
  }
  func.func @transform_1(%arg0: i32) -> (i32, i32) {
    %c0_i32 = arith.constant 0 : i32
    %c0_i32_0 = arith.constant 0 : i32
    %c0_i32_1 = arith.constant 0 : i32
    return %c0_i32, %c0_i32_0 : i32, i32
  }
  func.func @transform_2(%arg0: i32) -> (i32, i32) {
    %c0_i32 = arith.constant 0 : i32
    %c0_i32_0 = arith.constant 0 : i32
    %c0_i32_1 = arith.constant 0 : i32
    return %c0_i32, %c0_i32_0 : i32, i32
  }
  func.func @transform_3(%arg0: i32) -> (i32, i32) {
    %c0_i32 = arith.constant 0 : i32
    %c0_i32_0 = arith.constant 0 : i32
    return %arg0, %c0_i32 : i32, i32
  }
}

</mosaic_0001>

<bundles_post_ra>
// kernel: tpu_custom_call.1
= control target key start
LH: loop header
LB: loop body
LE: loop exit
PB: predicated region body
PF: predicated region fallthrough
CT: control target
= control target key end

     0   :  { %8 = vsyncpa [#allocation3], 0  ;;  %s561_s0 = inlined_call_operand.hbm [shape: bf16[128,128], index: 0, kind: input, shape index: {}]   ;;  %s562_s1 = inlined_call_operand.hbm [shape: bf16[128,128], index: 1, kind: input, shape index: {}]   ;;  %s563_s2 = inlined_call_operand.vmem [shape: f32[1,128], index: 2, kind: input, shape index: {}]   ;;  %s564_s3 = inlined_call_operand.hbm [shape: bf16[128,128], index: 3, kind: output, shape index: {}]  }
   0x1   :  { %9 = vsyncpa [#allocation6], 0 }
   0x2   :  { %10 = vsyncpa [#allocation4], 0  ;;  %s15_s14 = sshll.u32 %s561_s0, 4  ;;  %s515_s15 = smov [#allocation2]   ;;  %s16_s14 = int_to_ptr.hbm [resolvable:$true] %s15_s14 }
   0x3   :  { %s17_s16 = sshll.u32 %s515_s15, 4  ;;  %s28_s19 = sshll.u32 %s562_s1, 4  ;;  %s18_s16 = int_to_ptr.vmem [resolvable:$true] %s17_s16  ;;  %s29_s19 = int_to_ptr.hbm [resolvable:$true] %s28_s19 }
   0x4   :  { %s516_s20 = smov 64   ;;  %s517_s21 = smov 4  }
   0x5   :  { %23 = dma.hbm_to_vmem [thread:$0]  %s16_s14, 1024, %s18_s16, [#allocation3], %s516_s20, %s516_s20, %s517_s21  }
   0x6   :  { %s518_s22 = smov [#allocation5]  }
   0x7   :  { %s30_s23 = sshll.u32 %s518_s22, 4  ;;  %s31_s23 = int_to_ptr.vmem [resolvable:$true] %s30_s23 }
   0x8   :  { %36 = dma.hbm_to_vmem [thread:$0]  %s29_s19, 1024, %s31_s23, [#allocation6], %s516_s20, %s516_s20, %s517_s21  }
   0x9   :  { %509 = dma.done.wait [#allocation3], 1024  }
   0xa   :  { %510 = vsyncadd [#allocation3], 4294966272 }
   0xb   :  { %511 = dma.done.wait [#allocation6], 1024  }
   0xc   :  { %512 = vsyncadd [#allocation6], 4294966272  ;;  %v359_v0 = vld [vmem:[#allocation5 + $0x38] sm:$0xff]  ;;  %v358_v1 = vld [vmem:[#allocation5 + $0x30] sm:$0xff]  ;;  %s266_s27 = sshll.u32 %s564_s3, 4  ;;  %s267_s27 = int_to_ptr.hbm [resolvable:$true] %s266_s27 }
   0xd   :  { %179 = vmatpush.bf16.msra.mxu0 %v359_v0  ;;  %407 = vmatpush.bf16.msra.mxu1 %v359_v0  ;;  %v357_v2 = vld [vmem:[#allocation5 + $0x28] sm:$0xff]  ;;  %v356_v3 = vld [vmem:[#allocation5 + $0x20] sm:$0xff]  ;;  %v355_v4 = vld [vmem:[#allocation5 + $0x18] sm:$0xff] }
   0xe   :  { %408 = vmatpush.bf16.msra.mxu2 %v359_v0  ;;  %409 = vmatpush.bf16.msra.mxu3 %v359_v0  ;;  %v354_v5 = vld [vmem:[#allocation5 + $0x10] sm:$0xff]  ;;  %v353_v6 = vld [vmem:[#allocation5 + $0x8] sm:$0xff]  ;;  %v352_v7 = vld [vmem:[#allocation5] sm:$0xff] }
   0xf   :  { %v344_v8 = vld [vmem:[#allocation2] sm:$0xff]  ;;  %v346_v9 = vld [vmem:[#allocation2 + $0x10] sm:$0xff]  ;;  %v345_v12 = vld [vmem:[#allocation2 + $0x8] sm:$0xff] }
  0x10   :  { %v348_v10 = vld [vmem:[#allocation2 + $0x20] sm:$0xff]  ;;  %v350_v11 = vld [vmem:[#allocation2 + $0x30] sm:$0xff]  ;;  %v347_v13 = vld [vmem:[#allocation2 + $0x18] sm:$0xff] }
  0x11   :  { %180 = vmatpush.bf16.msra.mxu0 %v358_v1  ;;  %410 = vmatpush.bf16.msra.mxu1 %v358_v1  ;;  %v349_v14 = vld [vmem:[#allocation2 + $0x28] sm:$0xff]  ;;  %v351_v15 = vld [vmem:[#allocation2 + $0x38] sm:$0xff]  ;;  %v436_v18 = vld [vmem:[%s563_s2] ss:$0 sm:$0xff]  ;;  %s519_s2 = smov [#allocation7]  }
  0x12   :  { %411 = vmatpush.bf16.msra.mxu2 %v358_v1  ;;  %412 = vmatpush.bf16.msra.mxu3 %v358_v1  ;;  %s264_s24 = sshll.u32 %s519_s2, 4  ;;  %s265_s24 = int_to_ptr.vmem [resolvable:$true] %s264_s24 }
  0x15   :  { %181 = vmatpush.bf16.msra.mxu0 %v357_v2  ;;  %413 = vmatpush.bf16.msra.mxu1 %v357_v2 }
  0x16   :  { %414 = vmatpush.bf16.msra.mxu2 %v357_v2  ;;  %415 = vmatpush.bf16.msra.mxu3 %v357_v2 }
  0x19   :  { %182 = vmatpush.bf16.msra.mxu0 %v356_v3  ;;  %416 = vmatpush.bf16.msra.mxu1 %v356_v3 }
  0x1a   :  { %417 = vmatpush.bf16.msra.mxu2 %v356_v3  ;;  %418 = vmatpush.bf16.msra.mxu3 %v356_v3 }
  0x1d   :  { %183 = vmatpush.bf16.msra.mxu0 %v355_v4  ;;  %419 = vmatpush.bf16.msra.mxu1 %v355_v4 }
  0x1e   :  { %420 = vmatpush.bf16.msra.mxu2 %v355_v4  ;;  %421 = vmatpush.bf16.msra.mxu3 %v355_v4 }
  0x21   :  { %184 = vmatpush.bf16.msra.mxu0 %v354_v5  ;;  %422 = vmatpush.bf16.msra.mxu1 %v354_v5 }
  0x22   :  { %423 = vmatpush.bf16.msra.mxu2 %v354_v5  ;;  %424 = vmatpush.bf16.msra.mxu3 %v354_v5 }
  0x25   :  { %185 = vmatpush.bf16.msra.mxu0 %v353_v6  ;;  %425 = vmatpush.bf16.msra.mxu1 %v353_v6 }
  0x26   :  { %426 = vmatpush.bf16.msra.mxu2 %v353_v6  ;;  %427 = vmatpush.bf16.msra.mxu3 %v353_v6 }
  0x29   :  { %186 = vmatpush.bf16.msra.mxu0 %v352_v7  ;;  %428 = vmatpush.bf16.msra.mxu1 %v352_v7 }
  0x2a   :  { %429 = vmatpush.bf16.msra.mxu2 %v352_v7  ;;  %430 = vmatpush.bf16.msra.mxu3 %v352_v7 }
  0x2c   :  { %187 = vmatmul.bf16.vlgmr.msra.gmra.mxu0 %v344_v8  ;;  %197 = vmatmul.bf16.vlgmr.msra.gmra.mxu1 %v346_v9 }
  0x2d   :  { %207 = vmatmul.bf16.vlgmr.msra.gmra.mxu2 %v348_v10  ;;  %217 = vmatmul.bf16.vlgmr.msra.gmra.mxu3 %v350_v11 }
  0x3c   :  { %192 = vmatmul.bf16.gmra.mxu0 %v345_v12  ;;  %202 = vmatmul.bf16.gmra.mxu1 %v347_v13 }
  0x3d   :  { %212 = vmatmul.bf16.gmra.mxu2 %v349_v14  ;;  %222 = vmatmul.bf16.gmra.mxu3 %v351_v15 }
  0xa9   :  { %v188_v16 = vpop.f32.mrf.mxu0  ;;  %v198_v17 = vpop.f32.mrf.mxu1 }
  0xaa   :  { %v189_v23 = vadd.f32 %v436_v18, %v188_v16  ;;  %v199_v24 = vadd.f32 %v436_v18, %v198_v17 }
  0xb0   :  { %v208_v19 = vpop.f32.mrf.mxu2  ;;  %v218_v20 = vpop.f32.mrf.mxu3 }
  0xb1   :  { %v190_v21 = vpop.f32.mrf.mxu0  ;;  %v200_v22 = vpop.f32.mrf.mxu1  ;;  %v209_v31 = vadd.f32 %v436_v18, %v208_v19  ;;  %v219_v32 = vadd.f32 %v436_v18, %v218_v20 }
  0xb2   :  { %v191_v25 = vadd.f32 %v436_v18, %v190_v21  ;;  %v201_v26 = vadd.f32 %v436_v18, %v200_v22 }
  0xb4   :  { %v363_v27 = vpack.c.bf16 %v191_v25, %v189_v23  ;;  %v373_v28 = vpack.c.bf16 %v201_v26, %v199_v24 }
  0xb6   :  { %364 = vst [vmem:[#allocation7] sm:$0xff] %v363_v27  }
  0xb7   :  { %401 = vst [vmem:[#allocation7 + $0x10] sm:$0xff] %v373_v28  }
  0xb8   :  { %v210_v29 = vpop.f32.mrf.mxu2  ;;  %v220_v30 = vpop.f32.mrf.mxu3 }
  0xb9   :  { %v211_v33 = vadd.f32 %v436_v18, %v210_v29  ;;  %v221_v34 = vadd.f32 %v436_v18, %v220_v30  ;;  %v193_v35 = vpop.f32.mrf.mxu0  ;;  %v203_v36 = vpop.f32.mrf.mxu1 }
  0xba   :  { %v194_v43 = vadd.f32 %v436_v18, %v193_v35  ;;  %v204_v44 = vadd.f32 %v436_v18, %v203_v36 }
  0xbb   :  { %v383_v37 = vpack.c.bf16 %v211_v33, %v209_v31  ;;  %v393_v38 = vpack.c.bf16 %v221_v34, %v219_v32 }
  0xbd   :  { %403 = vst [vmem:[#allocation7 + $0x20] sm:$0xff] %v383_v37  }
  0xbe   :  { %405 = vst [vmem:[#allocation7 + $0x30] sm:$0xff] %v393_v38  }
  0xc0   :  { %v213_v39 = vpop.f32.mrf.mxu2  ;;  %v223_v40 = vpop.f32.mrf.mxu3 }
  0xc1   :  { %v195_v41 = vpop.f32.mrf.mxu0  ;;  %v205_v42 = vpop.f32.mrf.mxu1  ;;  %v214_v51 = vadd.f32 %v436_v18, %v213_v39  ;;  %v224_v52 = vadd.f32 %v436_v18, %v223_v40 }
  0xc2   :  { %v196_v45 = vadd.f32 %v436_v18, %v195_v41  ;;  %v206_v46 = vadd.f32 %v436_v18, %v205_v42 }
  0xc4   :  { %v368_v47 = vpack.c.bf16 %v196_v45, %v194_v43  ;;  %v378_v48 = vpack.c.bf16 %v206_v46, %v204_v44 }
  0xc6   :  { %400 = vst [vmem:[#allocation7 + $0x8] sm:$0xff] %v368_v47  }
  0xc7   :  { %402 = vst [vmem:[#allocation7 + $0x18] sm:$0xff] %v378_v48  }
  0xc8   :  { %v215_v49 = vpop.f32.mrf.mxu2  ;;  %v225_v50 = vpop.f32.mrf.mxu3 }
  0xc9   :  { %v216_v53 = vadd.f32 %v436_v18, %v215_v49  ;;  %v226_v54 = vadd.f32 %v436_v18, %v225_v50 }
  0xcb   :  { %v388_v55 = vpack.c.bf16 %v216_v53, %v214_v51  ;;  %v398_v56 = vpack.c.bf16 %v226_v54, %v224_v52 }
  0xcd   :  { %404 = vst [vmem:[#allocation7 + $0x28] sm:$0xff] %v388_v55  }
  0xce   :  { %406 = vst [vmem:[#allocation7 + $0x38] sm:$0xff] %v398_v56  }
  0xcf   :  { %272 = dma.vmem_to_hbm [thread:$0]  %s265_s24, 1024, %s267_s27, [#allocation4], %s516_s20, %s516_s20, %s517_s21  }
  0xd0   :  { %513 = dma.done.wait [#allocation4], 1024  }
  0xd1   :  { %514 = vsyncadd [#allocation4], 4294966272 }
  0xd2   :  { %277 = vsyncpa [#allocation3], 1 }
  0xd3   :  { %278 = vsyncpa [#allocation6], 1 }
  0xd4   :  { %279 = vsyncpa [#allocation4], 1 }

</bundles_post_ra>
